<compile_context>
chip_gen: v6e
topology: v6e:2x2x1
jax: 0.10.0
libtpu: 0.0.40
codegen_flags: <defaults>
</compile_context>

<pallas_src>
import functools

import jax
import jax.numpy as jnp
from jax import lax
from jax.experimental import pallas as pl
from jax.experimental.pallas import tpu as pltpu


def _lstm_fc_kernel(x_ref,      # (T, bb, D)   time-major input, batch block
                    wih_f_ref,  # (D, 4H)      forward  W_ih^T
                    whh_f_ref,  # (H, 4H)      forward  W_hh^T
                    b_f_ref,    # (1, 4H)      forward  b_ih + b_hh
                    wih_b_ref,  # (D, 4H)      backward W_ih^T
                    b_b_ref,    # (1, 4H)      backward b_ih + b_hh
                    w1_ref,     # (2H, F)      fc1 weight^T
                    b1_ref,     # (1, F)
                    w2_ref,     # (F, O_pad)   fc2 weight^T (lane-padded)
                    b2_ref,     # (1, O_pad)
                    out_ref):   # (bb, O_pad)
    T, bb, D = x_ref.shape
    H = whh_f_ref.shape[0]
    H4 = 4 * H

    # ---- hoisted input projection: ONE batched MXU pass over all timesteps,
    # bias folded in.  Rows are time-major: step t occupies rows [t*bb, (t+1)*bb).
    x2d = x_ref[...].reshape(T * bb, D)
    xproj = (jnp.dot(x2d, wih_f_ref[...], preferred_element_type=jnp.float32)
             + b_f_ref[...])                                        # (T*bb, 4H)

    whh = whh_f_ref[...]                                            # keep resident

    # Lane mask selecting the g-gate block (tanh) vs i/f/o (sigmoid). Hoisted.
    lane = lax.broadcasted_iota(jnp.int32, (bb, H4), 1)
    g_mask = (lane >= 2 * H) & (lane < 3 * H)

    h = jnp.zeros((bb, H), jnp.float32)
    c = jnp.zeros((bb, H), jnp.float32)

    # ---- forward recurrence, statically unrolled (T is small & static).
    # PyTorch gate order: [i, f, g, o].
    for t in range(T):
        gates = xproj[t * bb:(t + 1) * bb, :] + jnp.dot(
            h, whh, preferred_element_type=jnp.float32)             # (bb, 4H)
        # Two full-vreg EUP passes + one VPU select (no per-gate transcendentals).
        act = jnp.where(g_mask, jnp.tanh(gates), jax.nn.sigmoid(gates))
        i_g = act[:, 0 * H:1 * H]
        f_g = act[:, 1 * H:2 * H]
        g_g = act[:, 2 * H:3 * H]
        o_g = act[:, 3 * H:4 * H]
        c = f_g * c + i_g * g_g
        h = o_g * jnp.tanh(c)
    h_fwd = h                                                       # (bb, H)

    # ---- backward direction: single step on x[:, -1, :] from zero state.
    # f-gate is dead (c0 == 0) and is never computed.
    x_last = x_ref[T - 1]                                           # (bb, D)
    gates_b = (jnp.dot(x_last, wih_b_ref[...], preferred_element_type=jnp.float32)
               + b_b_ref[...])
    sg_b = jax.nn.sigmoid(gates_b)
    tg_b = jnp.tanh(gates_b)
    i_b = sg_b[:, 0 * H:1 * H]
    g_b = tg_b[:, 2 * H:3 * H]
    o_b = sg_b[:, 3 * H:4 * H]
    h_bwd = o_b * jnp.tanh(i_b * g_b)                               # (bb, H)

    h_cat = jnp.concatenate([h_fwd, h_bwd], axis=-1)                # (bb, 2H)

    # ---- FC head: Linear(2H, F) -> ReLU -> Linear(F, O_pad) (lane-dense store).
    fc1 = jnp.maximum(
        jnp.dot(h_cat, w1_ref[...], preferred_element_type=jnp.float32)
        + b1_ref[...], 0.0)
    out_ref[...] = (jnp.dot(fc1, w2_ref[...], preferred_element_type=jnp.float32)
                    + b2_ref[...])


def prepare_params(params, lane=128):
    """One-time weight prep (transposes, bias fusion, lane padding). Keep OUTSIDE jit."""
    H = params["w_hh_f"].shape[1]
    O = params["w_fc2"].shape[0]
    O_pad = max(lane, ((O + lane - 1) // lane) * lane)
    prepped = {
        "wih_f": params["w_ih_f"].T.astype(jnp.float32),                     # (D, 4H)
        "whh_f": params["w_hh_f"].T.astype(jnp.float32),                     # (H, 4H)
        "b_f": (params["b_ih_f"] + params["b_hh_f"]).reshape(1, 4 * H).astype(jnp.float32),
        "wih_b": params["w_ih_b"].T.astype(jnp.float32),                     # (D, 4H)
        "b_b": (params["b_ih_b"] + params["b_hh_b"]).reshape(1, 4 * H).astype(jnp.float32),
        "w1": params["w_fc1"].T.astype(jnp.float32),                         # (2H, F)
        "b1": params["b_fc1"].reshape(1, -1).astype(jnp.float32),            # (1, F)
        "w2": jnp.pad(params["w_fc2"].T.astype(jnp.float32),
                      ((0, 0), (0, O_pad - O))),                             # (F, O_pad)
        "b2": jnp.pad(params["b_fc2"].astype(jnp.float32),
                      (0, O_pad - O)).reshape(1, O_pad),                     # (1, O_pad)
    }
    return prepped, O


@functools.partial(jax.jit, static_argnames=("out_features",))
def lstm_model_forward(x, prepped, *, out_features):
    """x: (B, T, D) float32, batch_first like the PyTorch module. Returns (B, out_features)."""
    B, T, D = x.shape
    H = prepped["whh_f"].shape[0]
    H4 = 4 * H
    F = prepped["w1"].shape[1]
    O_pad = prepped["w2"].shape[1]

    # Pad batch to a full 8-sublane tile; grid over batch blocks (parallel axis).
    B_pad = max(8, ((B + 7) // 8) * 8)
    bb = B_pad if B_pad <= 128 else 128
    B_pad = ((B_pad + bb - 1) // bb) * bb
    grid = (B_pad // bb,)

    x_tm = jnp.transpose(x.astype(jnp.float32), (1, 0, 2))          # (T, B, D)
    x_tm = jnp.pad(x_tm, ((0, 0), (0, B_pad - B), (0, 0)))          # (T, B_pad, D)

    def const(shape):
        return pl.BlockSpec(shape, lambda i: (0,) * len(shape))

    out_pad = pl.pallas_call(
        _lstm_fc_kernel,
        out_shape=jax.ShapeDtypeStruct((B_pad, O_pad), jnp.float32),
        grid=grid,
        in_specs=[
            pl.BlockSpec((T, bb, D), lambda i: (0, i, 0)),          # x (batch-blocked)
            const((D, H4)),                                          # wih_f
            const((H, H4)),                                          # whh_f
            const((1, H4)),                                          # b_f
            const((D, H4)),                                          # wih_b
            const((1, H4)),                                          # b_b
            const((2 * H, F)),                                       # w1
            const((1, F)),                                           # b1
            const((F, O_pad)),                                       # w2
            const((1, O_pad)),                                       # b2
        ],
        out_specs=pl.BlockSpec((bb, O_pad), lambda i: (i, 0)),
        compiler_params=pltpu.CompilerParams(
            dimension_semantics=("parallel",)),                      # shards over TCs (v7x)
    )(x_tm, prepped["wih_f"], prepped["whh_f"], prepped["b_f"],
      prepped["wih_b"], prepped["b_b"], prepped["w1"], prepped["b1"],
      prepped["w2"], prepped["b2"])

    return out_pad[:B, :out_features]


def init_params(key, D, H, O, fc_hidden=128):
    """Deterministic init, PyTorch shape conventions (W_ih:(4H,D), W_hh:(4H,H), fc W:(out,in))."""
    ks = jax.random.split(key, 12)
    s = 1.0 / float(H) ** 0.5

    def u(k, shape):
        return jax.random.uniform(k, shape, jnp.float32, -s, s)

    return {
        "w_ih_f": u(ks[0], (4 * H, D)), "w_hh_f": u(ks[1], (4 * H, H)),
        "b_ih_f": u(ks[2], (4 * H,)),   "b_hh_f": u(ks[3], (4 * H,)),
        "w_ih_b": u(ks[4], (4 * H, D)), "w_hh_b": u(ks[5], (4 * H, H)),
        "b_ih_b": u(ks[6], (4 * H,)),   "b_hh_b": u(ks[7], (4 * H,)),
        "w_fc1": u(ks[8], (fc_hidden, 2 * H)), "b_fc1": u(ks[9], (fc_hidden,)),
        "w_fc2": u(ks[10], (O, fc_hidden)),    "b_fc2": u(ks[11], (O,)),
    }


def reference_forward(x, params):
    """Pure-JAX reference mirroring torch.nn.LSTM(bidirectional) + fc on lstm_out[:, -1, :]."""
    B, T, D = x.shape
    H = params["w_hh_f"].shape[1]

    def cell(x_t, h, c, w_ih, w_hh, b_ih, b_hh):
        gates = x_t @ w_ih.T + b_ih + h @ w_hh.T + b_hh
        i, f, g, o = jnp.split(gates, 4, axis=-1)
        i, f, o = jax.nn.sigmoid(i), jax.nn.sigmoid(f), jax.nn.sigmoid(o)
        g = jnp.tanh(g)
        c = f * c + i * g
        return o * jnp.tanh(c), c

    h = jnp.zeros((B, H), jnp.float32)
    c = jnp.zeros((B, H), jnp.float32)
    for t in range(T):
        h, c = cell(x[:, t], h, c, params["w_ih_f"], params["w_hh_f"],
                    params["b_ih_f"], params["b_hh_f"])
    hb, _ = cell(x[:, T - 1], jnp.zeros((B, H), jnp.float32), jnp.zeros((B, H), jnp.float32),
                 params["w_ih_b"], params["w_hh_b"], params["b_ih_b"], params["b_hh_b"])
    h_cat = jnp.concatenate([h, hb], axis=-1)
    fc1 = jnp.maximum(h_cat @ params["w_fc1"].T + params["b_fc1"], 0.0)
    return fc1 @ params["w_fc2"].T + params["b_fc2"]


if __name__ == "__main__":
    # Small shapes consistent with the module (fc hidden=128, output=48 fixed by the module).
    B, T, D, H, O = 2, 8, 16, 32, 48   # 4H = 128 -> one full lane vreg per gate vector

    key = jax.random.PRNGKey(0)
    kx, kp = jax.random.split(key)
    x = jax.random.normal(kx, (B, T, D), jnp.float32)
    params = init_params(kp, D, H, O)

    prepped, n_out = prepare_params(params)          # one-time weight prep, outside jit
    out = jax.block_until_ready(lstm_model_forward(x, prepped, out_features=n_out))
    ref = jax.block_until_ready(reference_forward(x, params))

    assert out.shape == (B, O), out.shape
    max_err = float(jnp.max(jnp.abs(out - ref)))
    assert max_err < 1e-3, f"mismatch vs reference: {max_err}"
    print("KERNEL_OK")
</pallas_src>

<mosaic_0001>
module attributes {stable_mosaic.version = 11 : i64} {
  func.func @_lstm_fc_kernel(%arg0: i32, %arg1: memref<8x8x16xf32, #tpu.memory_space<vmem>>, %arg2: memref<16x128xf32, #tpu.memory_space<vmem>>, %arg3: memref<32x128xf32, #tpu.memory_space<vmem>>, %arg4: memref<1x128xf32, #tpu.memory_space<vmem>>, %arg5: memref<16x128xf32, #tpu.memory_space<vmem>>, %arg6: memref<1x128xf32, #tpu.memory_space<vmem>>, %arg7: memref<64x128xf32, #tpu.memory_space<vmem>>, %arg8: memref<1x128xf32, #tpu.memory_space<vmem>>, %arg9: memref<128x128xf32, #tpu.memory_space<vmem>>, %arg10: memref<1x128xf32, #tpu.memory_space<vmem>>, %arg11: memref<8x128xf32, #tpu.memory_space<vmem>>) attributes {dimension_semantics = [#tpu.dimension_semantics<parallel>], iteration_bounds = array<i64: 1>, scalar_prefetch = 0 : i64, scratch_operands = 0 : i64, tpu.core_type = #tpu.core_type<tc>, window_params = [{transform_indices = @transform_0, window_bounds = array<i64: 8, 8, 16>}, {pipeline_mode = #tpu.pipeline_mode<synchronous>, transform_indices = @transform_1, window_bounds = array<i64: 16, 128>}, {pipeline_mode = #tpu.pipeline_mode<synchronous>, transform_indices = @transform_2, window_bounds = array<i64: 32, 128>}, {pipeline_mode = #tpu.pipeline_mode<synchronous>, transform_indices = @transform_3, window_bounds = array<i64: 1, 128>}, {pipeline_mode = #tpu.pipeline_mode<synchronous>, transform_indices = @transform_4, window_bounds = array<i64: 16, 128>}, {pipeline_mode = #tpu.pipeline_mode<synchronous>, transform_indices = @transform_5, window_bounds = array<i64: 1, 128>}, {pipeline_mode = #tpu.pipeline_mode<synchronous>, transform_indices = @transform_6, window_bounds = array<i64: 64, 128>}, {pipeline_mode = #tpu.pipeline_mode<synchronous>, transform_indices = @transform_7, window_bounds = array<i64: 1, 128>}, {pipeline_mode = #tpu.pipeline_mode<synchronous>, transform_indices = @transform_8, window_bounds = array<i64: 128, 128>}, {pipeline_mode = #tpu.pipeline_mode<synchronous>, transform_indices = @transform_9, window_bounds = array<i64: 1, 128>}, {transform_indices = @transform_10, window_bounds = array<i64: 8, 128>}]} {
    %c0 = arith.constant 0 : index
    %c0_0 = arith.constant 0 : index
    %c0_1 = arith.constant 0 : index
    %0 = vector.load %arg1[%c0, %c0_0, %c0_1] : memref<8x8x16xf32, #tpu.memory_space<vmem>>, vector<8x8x16xf32>
    %1 = vector.shape_cast %0 : vector<8x8x16xf32> to vector<64x16xf32>
    %c0_2 = arith.constant 0 : index
    %c0_3 = arith.constant 0 : index
    %2 = vector.load %arg2[%c0_2, %c0_3] : memref<16x128xf32, #tpu.memory_space<vmem>>, vector<16x128xf32>
    %cst = arith.constant dense<0.000000e+00> : vector<64x128xf32>
    %3 = tpu.matmul %1, %2, %cst {dimension_numbers = #tpu.dot_dimension_numbers<[1], [0], [0], [1], [0, 0, 1, 1], [], []>} : vector<64x16xf32>, vector<16x128xf32>, vector<64x128xf32> -> vector<64x128xf32>
    %c0_4 = arith.constant 0 : index
    %c0_5 = arith.constant 0 : index
    %4 = vector.load %arg4[%c0_4, %c0_5] : memref<1x128xf32, #tpu.memory_space<vmem>>, vector<1x128xf32>
    %5 = vector.broadcast %4 : vector<1x128xf32> to vector<64x128xf32>
    %6 = arith.addf %3, %5 : vector<64x128xf32>
    %c0_6 = arith.constant 0 : index
    %c0_7 = arith.constant 0 : index
    %7 = vector.load %arg3[%c0_6, %c0_7] : memref<32x128xf32, #tpu.memory_space<vmem>>, vector<32x128xf32>
    %8 = tpu.iota {dimensions = array<i32: 1>} : vector<8x128xi32>
    %c64_i32 = arith.constant 64 : i32
    %9 = vector.broadcast %c64_i32 : i32 to vector<8x128xi32>
    %10 = arith.cmpi sge, %8, %9 : vector<8x128xi32>
    %c96_i32 = arith.constant 96 : i32
    %11 = vector.broadcast %c96_i32 : i32 to vector<8x128xi32>
    %12 = arith.cmpi slt, %8, %11 : vector<8x128xi32>
    %13 = arith.andi %10, %12 : vector<8x128xi1>
    %cst_8 = arith.constant 0.000000e+00 : f32
    %14 = vector.broadcast %cst_8 : f32 to vector<8x32xf32>
    %cst_9 = arith.constant 0.000000e+00 : f32
    %15 = vector.broadcast %cst_9 : f32 to vector<8x32xf32>
    %16 = vector.extract_strided_slice %6 {offsets = [0, 0], sizes = [8, 128], strides = [1, 1]} : vector<64x128xf32> to vector<8x128xf32>
    %cst_10 = arith.constant dense<0.000000e+00> : vector<8x128xf32>
    %17 = tpu.matmul %14, %7, %cst_10 {dimension_numbers = #tpu.dot_dimension_numbers<[1], [0], [0], [1], [0, 0, 1, 1], [], []>} : vector<8x32xf32>, vector<32x128xf32>, vector<8x128xf32> -> vector<8x128xf32>
    %18 = arith.addf %16, %17 : vector<8x128xf32>
    %19 = math.tanh %18 : vector<8x128xf32>
    %20 = arith.negf %18 : vector<8x128xf32>
    %21 = math.exp %20 : vector<8x128xf32>
    %cst_11 = arith.constant 1.000000e+00 : f32
    %22 = vector.broadcast %cst_11 : f32 to vector<8x128xf32>
    %23 = arith.addf %22, %21 : vector<8x128xf32>
    %24 = arith.divf %22, %23 : vector<8x128xf32>
    %25 = arith.select %13, %19, %24 : vector<8x128xi1>, vector<8x128xf32>
    %26 = vector.extract_strided_slice %25 {offsets = [0, 0], sizes = [8, 32], strides = [1, 1]} : vector<8x128xf32> to vector<8x32xf32>
    %27 = vector.extract_strided_slice %25 {offsets = [0, 32], sizes = [8, 32], strides = [1, 1]} : vector<8x128xf32> to vector<8x32xf32>
    %28 = vector.extract_strided_slice %25 {offsets = [0, 64], sizes = [8, 32], strides = [1, 1]} : vector<8x128xf32> to vector<8x32xf32>
    %29 = vector.extract_strided_slice %25 {offsets = [0, 96], sizes = [8, 32], strides = [1, 1]} : vector<8x128xf32> to vector<8x32xf32>
    %30 = arith.mulf %27, %15 : vector<8x32xf32>
    %31 = arith.mulf %26, %28 : vector<8x32xf32>
    %32 = arith.addf %30, %31 : vector<8x32xf32>
    %33 = math.tanh %32 : vector<8x32xf32>
    %34 = arith.mulf %29, %33 : vector<8x32xf32>
    %35 = vector.extract_strided_slice %6 {offsets = [8, 0], sizes = [8, 128], strides = [1, 1]} : vector<64x128xf32> to vector<8x128xf32>
    %cst_12 = arith.constant dense<0.000000e+00> : vector<8x128xf32>
    %36 = tpu.matmul %34, %7, %cst_12 {dimension_numbers = #tpu.dot_dimension_numbers<[1], [0], [0], [1], [0, 0, 1, 1], [], []>} : vector<8x32xf32>, vector<32x128xf32>, vector<8x128xf32> -> vector<8x128xf32>
    %37 = arith.addf %35, %36 : vector<8x128xf32>
    %38 = math.tanh %37 : vector<8x128xf32>
    %39 = arith.negf %37 : vector<8x128xf32>
    %40 = math.exp %39 : vector<8x128xf32>
    %cst_13 = arith.constant 1.000000e+00 : f32
    %41 = vector.broadcast %cst_13 : f32 to vector<8x128xf32>
    %42 = arith.addf %41, %40 : vector<8x128xf32>
    %43 = arith.divf %41, %42 : vector<8x128xf32>
    %44 = arith.select %13, %38, %43 : vector<8x128xi1>, vector<8x128xf32>
    %45 = vector.extract_strided_slice %44 {offsets = [0, 0], sizes = [8, 32], strides = [1, 1]} : vector<8x128xf32> to vector<8x32xf32>
    %46 = vector.extract_strided_slice %44 {offsets = [0, 32], sizes = [8, 32], strides = [1, 1]} : vector<8x128xf32> to vector<8x32xf32>
    %47 = vector.extract_strided_slice %44 {offsets = [0, 64], sizes = [8, 32], strides = [1, 1]} : vector<8x128xf32> to vector<8x32xf32>
    %48 = vector.extract_strided_slice %44 {offsets = [0, 96], sizes = [8, 32], strides = [1, 1]} : vector<8x128xf32> to vector<8x32xf32>
    %49 = arith.mulf %46, %32 : vector<8x32xf32>
    %50 = arith.mulf %45, %47 : vector<8x32xf32>
    %51 = arith.addf %49, %50 : vector<8x32xf32>
    %52 = math.tanh %51 : vector<8x32xf32>
    %53 = arith.mulf %48, %52 : vector<8x32xf32>
    %54 = vector.extract_strided_slice %6 {offsets = [16, 0], sizes = [8, 128], strides = [1, 1]} : vector<64x128xf32> to vector<8x128xf32>
    %cst_14 = arith.constant dense<0.000000e+00> : vector<8x128xf32>
    %55 = tpu.matmul %53, %7, %cst_14 {dimension_numbers = #tpu.dot_dimension_numbers<[1], [0], [0], [1], [0, 0, 1, 1], [], []>} : vector<8x32xf32>, vector<32x128xf32>, vector<8x128xf32> -> vector<8x128xf32>
    %56 = arith.addf %54, %55 : vector<8x128xf32>
    %57 = math.tanh %56 : vector<8x128xf32>
    %58 = arith.negf %56 : vector<8x128xf32>
    %59 = math.exp %58 : vector<8x128xf32>
    %cst_15 = arith.constant 1.000000e+00 : f32
    %60 = vector.broadcast %cst_15 : f32 to vector<8x128xf32>
    %61 = arith.addf %60, %59 : vector<8x128xf32>
    %62 = arith.divf %60, %61 : vector<8x128xf32>
    %63 = arith.select %13, %57, %62 : vector<8x128xi1>, vector<8x128xf32>
    %64 = vector.extract_strided_slice %63 {offsets = [0, 0], sizes = [8, 32], strides = [1, 1]} : vector<8x128xf32> to vector<8x32xf32>
    %65 = vector.extract_strided_slice %63 {offsets = [0, 32], sizes = [8, 32], strides = [1, 1]} : vector<8x128xf32> to vector<8x32xf32>
    %66 = vector.extract_strided_slice %63 {offsets = [0, 64], sizes = [8, 32], strides = [1, 1]} : vector<8x128xf32> to vector<8x32xf32>
    %67 = vector.extract_strided_slice %63 {offsets = [0, 96], sizes = [8, 32], strides = [1, 1]} : vector<8x128xf32> to vector<8x32xf32>
    %68 = arith.mulf %65, %51 : vector<8x32xf32>
    %69 = arith.mulf %64, %66 : vector<8x32xf32>
    %70 = arith.addf %68, %69 : vector<8x32xf32>
    %71 = math.tanh %70 : vector<8x32xf32>
    %72 = arith.mulf %67, %71 : vector<8x32xf32>
    %73 = vector.extract_strided_slice %6 {offsets = [24, 0], sizes = [8, 128], strides = [1, 1]} : vector<64x128xf32> to vector<8x128xf32>
    %cst_16 = arith.constant dense<0.000000e+00> : vector<8x128xf32>
    %74 = tpu.matmul %72, %7, %cst_16 {dimension_numbers = #tpu.dot_dimension_numbers<[1], [0], [0], [1], [0, 0, 1, 1], [], []>} : vector<8x32xf32>, vector<32x128xf32>, vector<8x128xf32> -> vector<8x128xf32>
    %75 = arith.addf %73, %74 : vector<8x128xf32>
    %76 = math.tanh %75 : vector<8x128xf32>
    %77 = arith.negf %75 : vector<8x128xf32>
    %78 = math.exp %77 : vector<8x128xf32>
    %cst_17 = arith.constant 1.000000e+00 : f32
    %79 = vector.broadcast %cst_17 : f32 to vector<8x128xf32>
    %80 = arith.addf %79, %78 : vector<8x128xf32>
    %81 = arith.divf %79, %80 : vector<8x128xf32>
    %82 = arith.select %13, %76, %81 : vector<8x128xi1>, vector<8x128xf32>
    %83 = vector.extract_strided_slice %82 {offsets = [0, 0], sizes = [8, 32], strides = [1, 1]} : vector<8x128xf32> to vector<8x32xf32>
    %84 = vector.extract_strided_slice %82 {offsets = [0, 32], sizes = [8, 32], strides = [1, 1]} : vector<8x128xf32> to vector<8x32xf32>
    %85 = vector.extract_strided_slice %82 {offsets = [0, 64], sizes = [8, 32], strides = [1, 1]} : vector<8x128xf32> to vector<8x32xf32>
    %86 = vector.extract_strided_slice %82 {offsets = [0, 96], sizes = [8, 32], strides = [1, 1]} : vector<8x128xf32> to vector<8x32xf32>
    %87 = arith.mulf %84, %70 : vector<8x32xf32>
    %88 = arith.mulf %83, %85 : vector<8x32xf32>
    %89 = arith.addf %87, %88 : vector<8x32xf32>
    %90 = math.tanh %89 : vector<8x32xf32>
    %91 = arith.mulf %86, %90 : vector<8x32xf32>
    %92 = vector.extract_strided_slice %6 {offsets = [32, 0], sizes = [8, 128], strides = [1, 1]} : vector<64x128xf32> to vector<8x128xf32>
    %cst_18 = arith.constant dense<0.000000e+00> : vector<8x128xf32>
    %93 = tpu.matmul %91, %7, %cst_18 {dimension_numbers = #tpu.dot_dimension_numbers<[1], [0], [0], [1], [0, 0, 1, 1], [], []>} : vector<8x32xf32>, vector<32x128xf32>, vector<8x128xf32> -> vector<8x128xf32>
    %94 = arith.addf %92, %93 : vector<8x128xf32>
    %95 = math.tanh %94 : vector<8x128xf32>
    %96 = arith.negf %94 : vector<8x128xf32>
    %97 = math.exp %96 : vector<8x128xf32>
    %cst_19 = arith.constant 1.000000e+00 : f32
    %98 = vector.broadcast %cst_19 : f32 to vector<8x128xf32>
    %99 = arith.addf %98, %97 : vector<8x128xf32>
    %100 = arith.divf %98, %99 : vector<8x128xf32>
    %101 = arith.select %13, %95, %100 : vector<8x128xi1>, vector<8x128xf32>
    %102 = vector.extract_strided_slice %101 {offsets = [0, 0], sizes = [8, 32], strides = [1, 1]} : vector<8x128xf32> to vector<8x32xf32>
    %103 = vector.extract_strided_slice %101 {offsets = [0, 32], sizes = [8, 32], strides = [1, 1]} : vector<8x128xf32> to vector<8x32xf32>
    %104 = vector.extract_strided_slice %101 {offsets = [0, 64], sizes = [8, 32], strides = [1, 1]} : vector<8x128xf32> to vector<8x32xf32>
    %105 = vector.extract_strided_slice %101 {offsets = [0, 96], sizes = [8, 32], strides = [1, 1]} : vector<8x128xf32> to vector<8x32xf32>
    %106 = arith.mulf %103, %89 : vector<8x32xf32>
    %107 = arith.mulf %102, %104 : vector<8x32xf32>
    %108 = arith.addf %106, %107 : vector<8x32xf32>
    %109 = math.tanh %108 : vector<8x32xf32>
    %110 = arith.mulf %105, %109 : vector<8x32xf32>
    %111 = vector.extract_strided_slice %6 {offsets = [40, 0], sizes = [8, 128], strides = [1, 1]} : vector<64x128xf32> to vector<8x128xf32>
    %cst_20 = arith.constant dense<0.000000e+00> : vector<8x128xf32>
    %112 = tpu.matmul %110, %7, %cst_20 {dimension_numbers = #tpu.dot_dimension_numbers<[1], [0], [0], [1], [0, 0, 1, 1], [], []>} : vector<8x32xf32>, vector<32x128xf32>, vector<8x128xf32> -> vector<8x128xf32>
    %113 = arith.addf %111, %112 : vector<8x128xf32>
    %114 = math.tanh %113 : vector<8x128xf32>
    %115 = arith.negf %113 : vector<8x128xf32>
    %116 = math.exp %115 : vector<8x128xf32>
    %cst_21 = arith.constant 1.000000e+00 : f32
    %117 = vector.broadcast %cst_21 : f32 to vector<8x128xf32>
    %118 = arith.addf %117, %116 : vector<8x128xf32>
    %119 = arith.divf %117, %118 : vector<8x128xf32>
    %120 = arith.select %13, %114, %119 : vector<8x128xi1>, vector<8x128xf32>
    %121 = vector.extract_strided_slice %120 {offsets = [0, 0], sizes = [8, 32], strides = [1, 1]} : vector<8x128xf32> to vector<8x32xf32>
    %122 = vector.extract_strided_slice %120 {offsets = [0, 32], sizes = [8, 32], strides = [1, 1]} : vector<8x128xf32> to vector<8x32xf32>
    %123 = vector.extract_strided_slice %120 {offsets = [0, 64], sizes = [8, 32], strides = [1, 1]} : vector<8x128xf32> to vector<8x32xf32>
    %124 = vector.extract_strided_slice %120 {offsets = [0, 96], sizes = [8, 32], strides = [1, 1]} : vector<8x128xf32> to vector<8x32xf32>
    %125 = arith.mulf %122, %108 : vector<8x32xf32>
    %126 = arith.mulf %121, %123 : vector<8x32xf32>
    %127 = arith.addf %125, %126 : vector<8x32xf32>
    %128 = math.tanh %127 : vector<8x32xf32>
    %129 = arith.mulf %124, %128 : vector<8x32xf32>
    %130 = vector.extract_strided_slice %6 {offsets = [48, 0], sizes = [8, 128], strides = [1, 1]} : vector<64x128xf32> to vector<8x128xf32>
    %cst_22 = arith.constant dense<0.000000e+00> : vector<8x128xf32>
    %131 = tpu.matmul %129, %7, %cst_22 {dimension_numbers = #tpu.dot_dimension_numbers<[1], [0], [0], [1], [0, 0, 1, 1], [], []>} : vector<8x32xf32>, vector<32x128xf32>, vector<8x128xf32> -> vector<8x128xf32>
    %132 = arith.addf %130, %131 : vector<8x128xf32>
    %133 = math.tanh %132 : vector<8x128xf32>
    %134 = arith.negf %132 : vector<8x128xf32>
    %135 = math.exp %134 : vector<8x128xf32>
    %cst_23 = arith.constant 1.000000e+00 : f32
    %136 = vector.broadcast %cst_23 : f32 to vector<8x128xf32>
    %137 = arith.addf %136, %135 : vector<8x128xf32>
    %138 = arith.divf %136, %137 : vector<8x128xf32>
    %139 = arith.select %13, %133, %138 : vector<8x128xi1>, vector<8x128xf32>
    %140 = vector.extract_strided_slice %139 {offsets = [0, 0], sizes = [8, 32], strides = [1, 1]} : vector<8x128xf32> to vector<8x32xf32>
    %141 = vector.extract_strided_slice %139 {offsets = [0, 32], sizes = [8, 32], strides = [1, 1]} : vector<8x128xf32> to vector<8x32xf32>
    %142 = vector.extract_strided_slice %139 {offsets = [0, 64], sizes = [8, 32], strides = [1, 1]} : vector<8x128xf32> to vector<8x32xf32>
    %143 = vector.extract_strided_slice %139 {offsets = [0, 96], sizes = [8, 32], strides = [1, 1]} : vector<8x128xf32> to vector<8x32xf32>
    %144 = arith.mulf %141, %127 : vector<8x32xf32>
    %145 = arith.mulf %140, %142 : vector<8x32xf32>
    %146 = arith.addf %144, %145 : vector<8x32xf32>
    %147 = math.tanh %146 : vector<8x32xf32>
    %148 = arith.mulf %143, %147 : vector<8x32xf32>
    %149 = vector.extract_strided_slice %6 {offsets = [56, 0], sizes = [8, 128], strides = [1, 1]} : vector<64x128xf32> to vector<8x128xf32>
    %cst_24 = arith.constant dense<0.000000e+00> : vector<8x128xf32>
    %150 = tpu.matmul %148, %7, %cst_24 {dimension_numbers = #tpu.dot_dimension_numbers<[1], [0], [0], [1], [0, 0, 1, 1], [], []>} : vector<8x32xf32>, vector<32x128xf32>, vector<8x128xf32> -> vector<8x128xf32>
    %151 = arith.addf %149, %150 : vector<8x128xf32>
    %152 = math.tanh %151 : vector<8x128xf32>
    %153 = arith.negf %151 : vector<8x128xf32>
    %154 = math.exp %153 : vector<8x128xf32>
    %cst_25 = arith.constant 1.000000e+00 : f32
    %155 = vector.broadcast %cst_25 : f32 to vector<8x128xf32>
    %156 = arith.addf %155, %154 : vector<8x128xf32>
    %157 = arith.divf %155, %156 : vector<8x128xf32>
    %158 = arith.select %13, %152, %157 : vector<8x128xi1>, vector<8x128xf32>
    %159 = vector.extract_strided_slice %158 {offsets = [0, 0], sizes = [8, 32], strides = [1, 1]} : vector<8x128xf32> to vector<8x32xf32>
    %160 = vector.extract_strided_slice %158 {offsets = [0, 32], sizes = [8, 32], strides = [1, 1]} : vector<8x128xf32> to vector<8x32xf32>
    %161 = vector.extract_strided_slice %158 {offsets = [0, 64], sizes = [8, 32], strides = [1, 1]} : vector<8x128xf32> to vector<8x32xf32>
    %162 = vector.extract_strided_slice %158 {offsets = [0, 96], sizes = [8, 32], strides = [1, 1]} : vector<8x128xf32> to vector<8x32xf32>
    %163 = arith.mulf %160, %146 : vector<8x32xf32>
    %164 = arith.mulf %159, %161 : vector<8x32xf32>
    %165 = arith.addf %163, %164 : vector<8x32xf32>
    %166 = math.tanh %165 : vector<8x32xf32>
    %167 = arith.mulf %162, %166 : vector<8x32xf32>
    %c7 = arith.constant 7 : index
    %c0_26 = arith.constant 0 : index
    %c0_27 = arith.constant 0 : index
    %168 = vector.load %arg1[%c7, %c0_26, %c0_27] : memref<8x8x16xf32, #tpu.memory_space<vmem>>, vector<1x8x16xf32>
    %169 = vector.shape_cast %168 : vector<1x8x16xf32> to vector<8x16xf32>
    %c0_28 = arith.constant 0 : index
    %c0_29 = arith.constant 0 : index
    %170 = vector.load %arg5[%c0_28, %c0_29] : memref<16x128xf32, #tpu.memory_space<vmem>>, vector<16x128xf32>
    %cst_30 = arith.constant dense<0.000000e+00> : vector<8x128xf32>
    %171 = tpu.matmul %169, %170, %cst_30 {dimension_numbers = #tpu.dot_dimension_numbers<[1], [0], [0], [1], [0, 0, 1, 1], [], []>} : vector<8x16xf32>, vector<16x128xf32>, vector<8x128xf32> -> vector<8x128xf32>
    %c0_31 = arith.constant 0 : index
    %c0_32 = arith.constant 0 : index
    %172 = vector.load %arg6[%c0_31, %c0_32] : memref<1x128xf32, #tpu.memory_space<vmem>>, vector<1x128xf32>
    %173 = vector.broadcast %172 : vector<1x128xf32> to vector<8x128xf32>
    %174 = arith.addf %171, %173 : vector<8x128xf32>
    %175 = arith.negf %174 : vector<8x128xf32>
    %176 = math.exp %175 : vector<8x128xf32>
    %cst_33 = arith.constant 1.000000e+00 : f32
    %177 = vector.broadcast %cst_33 : f32 to vector<8x128xf32>
    %178 = arith.addf %177, %176 : vector<8x128xf32>
    %179 = arith.divf %177, %178 : vector<8x128xf32>
    %180 = math.tanh %174 : vector<8x128xf32>
    %181 = vector.extract_strided_slice %179 {offsets = [0, 0], sizes = [8, 32], strides = [1, 1]} : vector<8x128xf32> to vector<8x32xf32>
    %182 = vector.extract_strided_slice %180 {offsets = [0, 64], sizes = [8, 32], strides = [1, 1]} : vector<8x128xf32> to vector<8x32xf32>
    %183 = vector.extract_strided_slice %179 {offsets = [0, 96], sizes = [8, 32], strides = [1, 1]} : vector<8x128xf32> to vector<8x32xf32>
    %184 = arith.mulf %181, %182 : vector<8x32xf32>
    %185 = math.tanh %184 : vector<8x32xf32>
    %186 = arith.mulf %183, %185 : vector<8x32xf32>
    %187 = tpu.concatenate %167, %186 in 1 : vector<8x32xf32>, vector<8x32xf32> -> vector<8x64xf32>
    %c0_34 = arith.constant 0 : index
    %c0_35 = arith.constant 0 : index
    %188 = vector.load %arg7[%c0_34, %c0_35] : memref<64x128xf32, #tpu.memory_space<vmem>>, vector<64x128xf32>
    %cst_36 = arith.constant dense<0.000000e+00> : vector<8x128xf32>
    %189 = tpu.matmul %187, %188, %cst_36 {dimension_numbers = #tpu.dot_dimension_numbers<[1], [0], [0], [1], [0, 0, 1, 1], [], []>} : vector<8x64xf32>, vector<64x128xf32>, vector<8x128xf32> -> vector<8x128xf32>
    %c0_37 = arith.constant 0 : index
    %c0_38 = arith.constant 0 : index
    %190 = vector.load %arg8[%c0_37, %c0_38] : memref<1x128xf32, #tpu.memory_space<vmem>>, vector<1x128xf32>
    %191 = vector.broadcast %190 : vector<1x128xf32> to vector<8x128xf32>
    %192 = arith.addf %189, %191 : vector<8x128xf32>
    %cst_39 = arith.constant 0.000000e+00 : f32
    %193 = vector.broadcast %cst_39 : f32 to vector<8x128xf32>
    %194 = arith.maximumf %192, %193 : vector<8x128xf32>
    %c0_40 = arith.constant 0 : index
    %c0_41 = arith.constant 0 : index
    %195 = vector.load %arg9[%c0_40, %c0_41] : memref<128x128xf32, #tpu.memory_space<vmem>>, vector<128x128xf32>
    %cst_42 = arith.constant dense<0.000000e+00> : vector<8x128xf32>
    %196 = tpu.matmul %194, %195, %cst_42 {dimension_numbers = #tpu.dot_dimension_numbers<[1], [0], [0], [1], [0, 0, 1, 1], [], []>} : vector<8x128xf32>, vector<128x128xf32>, vector<8x128xf32> -> vector<8x128xf32>
    %c0_43 = arith.constant 0 : index
    %c0_44 = arith.constant 0 : index
    %197 = vector.load %arg10[%c0_43, %c0_44] : memref<1x128xf32, #tpu.memory_space<vmem>>, vector<1x128xf32>
    %198 = vector.broadcast %197 : vector<1x128xf32> to vector<8x128xf32>
    %199 = arith.addf %196, %198 : vector<8x128xf32>
    %c0_45 = arith.constant 0 : index
    %c0_46 = arith.constant 0 : index
    %200 = vector.load %arg11[%c0_45, %c0_46] : memref<8x128xf32, #tpu.memory_space<vmem>>, vector<8x128xf32>
    tpu.vector_store %arg11[%c0_45, %c0_46], %199 {strides = array<i32>} : memref<8x128xf32, #tpu.memory_space<vmem>>, vector<8x128xf32>,
    return
  }
  func.func @transform_0(%arg0: i32) -> (i32, i32, i32) {
    %c0_i32 = arith.constant 0 : i32
    %c0_i32_0 = arith.constant 0 : i32
    %c0_i32_1 = arith.constant 0 : i32
    return %c0_i32, %arg0, %c0_i32_0 : i32, i32, i32
  }
  func.func @transform_1(%arg0: i32) -> (i32, i32) {
    %c0_i32 = arith.constant 0 : i32
    %c0_i32_0 = arith.constant 0 : i32
    %c0_i32_1 = arith.constant 0 : i32
    return %c0_i32, %c0_i32_0 : i32, i32
  }
  func.func @transform_2(%arg0: i32) -> (i32, i32) {
    %c0_i32 = arith.constant 0 : i32
    %c0_i32_0 = arith.constant 0 : i32
    %c0_i32_1 = arith.constant 0 : i32
    return %c0_i32, %c0_i32_0 : i32, i32
  }
  func.func @transform_3(%arg0: i32) -> (i32, i32) {
    %c0_i32 = arith.constant 0 : i32
    %c0_i32_0 = arith.constant 0 : i32
    %c0_i32_1 = arith.constant 0 : i32
    return %c0_i32, %c0_i32_0 : i32, i32
  }
  func.func @transform_4(%arg0: i32) -> (i32, i32) {
    %c0_i32 = arith.constant 0 : i32
    %c0_i32_0 = arith.constant 0 : i32
    %c0_i32_1 = arith.constant 0 : i32
    return %c0_i32, %c0_i32_0 : i32, i32
  }
  func.func @transform_5(%arg0: i32) -> (i32, i32) {
    %c0_i32 = arith.constant 0 : i32
    %c0_i32_0 = arith.constant 0 : i32
    %c0_i32_1 = arith.constant 0 : i32
    return %c0_i32, %c0_i32_0 : i32, i32
  }
  func.func @transform_6(%arg0: i32) -> (i32, i32) {
    %c0_i32 = arith.constant 0 : i32
    %c0_i32_0 = arith.constant 0 : i32
    %c0_i32_1 = arith.constant 0 : i32
    return %c0_i32, %c0_i32_0 : i32, i32
  }
  func.func @transform_7(%arg0: i32) -> (i32, i32) {
    %c0_i32 = arith.constant 0 : i32
    %c0_i32_0 = arith.constant 0 : i32
    %c0_i32_1 = arith.constant 0 : i32
    return %c0_i32, %c0_i32_0 : i32, i32
  }
  func.func @transform_8(%arg0: i32) -> (i32, i32) {
    %c0_i32 = arith.constant 0 : i32
    %c0_i32_0 = arith.constant 0 : i32
    %c0_i32_1 = arith.constant 0 : i32
    return %c0_i32, %c0_i32_0 : i32, i32
  }
  func.func @transform_9(%arg0: i32) -> (i32, i32) {
    %c0_i32 = arith.constant 0 : i32
    %c0_i32_0 = arith.constant 0 : i32
    %c0_i32_1 = arith.constant 0 : i32
    return %c0_i32, %c0_i32_0 : i32, i32
  }
  func.func @transform_10(%arg0: i32) -> (i32, i32) {
    %c0_i32 = arith.constant 0 : i32
    %c0_i32_0 = arith.constant 0 : i32
    return %arg0, %c0_i32 : i32, i32
  }
}

</mosaic_0001>

<bundles_post_ra>
// kernel: lstm_model_forward.1
= control target key start
LH: loop header
LB: loop body
LE: loop exit
PB: predicated region body
PF: predicated region fallthrough
CT: control target
= control target key end

     0   :  { %15 = vsyncpa [#allocation3], 0  ;;  %s2098_s0 = inlined_call_operand.vmem [shape: f32[8,8,16], index: 0, kind: input, shape index: {}]   ;;  %s2099_s1 = inlined_call_operand.vmem [shape: f32[16,128], index: 1, kind: input, shape index: {}]   ;;  %s2100_s2 = inlined_call_operand.vmem [shape: f32[32,128], index: 2, kind: input, shape index: {}]   ;;  %s2101_s3 = inlined_call_operand.vmem [shape: f32[1,128], index: 3, kind: input, shape index: {}]   ;;  %s2102_s4 = inlined_call_operand.hbm [shape: f32[16,128], index: 4, kind: input, shape index: {}]   ;;  %s2103_s5 = inlined_call_operand.vmem [shape: f32[1,128], index: 5, kind: input, shape index: {}]   ;;  %s2104_s6 = inlined_call_operand.vmem [shape: f32[64,128], index: 6, kind: input, shape index: {}]   ;;  %s2105_s7 = inlined_call_operand.vmem [shape: f32[1,128], index: 7, kind: input, shape index: {}]   ;;  %s2106_s8 = inlined_call_operand.hbm [shape: f32[128,128], index: 8, kind: input, shape index: {}]   ;;  %s2107_s9 = inlined_call_operand.vmem [shape: f32[1,128], index: 9, kind: input, shape index: {}]   ;;  %s2108_s10 = inlined_call_operand.vmem [shape: f32[8,128], index: 10, kind: output, shape index: {}]  }
   0x1   :  { %16 = vsyncpa [#allocation5], 0  ;;  %s1727_s13 = smov [#allocation2]  }
   0x2   :  { %s30_s14 = sshll.u32 %s1727_s13, 4  ;;  %s31_s14 = int_to_ptr.vmem [resolvable:$true] %s30_s14 }
   0x3   :  { %s1691_s15 = scalar_lea.vmem %s31_s14, 256  ;;  %p1696_p1 = scmp.lt.s32.totalorder %s31_s14, %s31_s14 }
   0x4   :  { %p1692_p0 = scmp.ne.s32.totalorder %s31_s14, %s1691_s15  ;;  %p1697_p2 = scmp.lt.s32.totalorder %s1691_s15, %s1691_s15 }
   0x6   :  { %p1698_p3 = por %p1697_p2, %p1696_p1 }
   0x8   :  { %p1699_p4 = pnand %p1698_p3, %p1692_p0 }
   0xa   :  { %1702 = shalt.err (!%p1699_p4)
}
   0xb   :  { %s1728_s16 = smov 128   ;;  %s1729_s17 = smov 8  }
   0xc   :  { %36 = dma.hbm_to_vmem [thread:$0]  %s2102_s4, 256, %s31_s14, [#allocation3], %s1728_s16, %s1728_s16, %s1729_s17  }
   0xd   :  { %s1730_s20 = smov [#allocation4]  }
   0xe   :  { %s48_s21 = sshll.u32 %s1730_s20, 4  ;;  %s49_s21 = int_to_ptr.vmem [resolvable:$true] %s48_s21 }
   0xf   :  { %s1711_s22 = scalar_lea.vmem %s49_s21, 2048  ;;  %p1716_p6 = scmp.lt.s32.totalorder %s49_s21, %s49_s21 }
  0x10   :  { %p1712_p5 = scmp.ne.s32.totalorder %s49_s21, %s1711_s22  ;;  %p1717_p7 = scmp.lt.s32.totalorder %s1711_s22, %s1711_s22 }
  0x12   :  { %p1718_p8 = por %p1717_p7, %p1716_p6 }
  0x14   :  { %p1719_p9 = pnand %p1718_p8, %p1712_p5 }
  0x16   :  { %1722 = shalt.err (!%p1719_p9)
}
  0x17   :  { %54 = dma.hbm_to_vmem [thread:$0]  %s2106_s8, 2048, %s49_s21, [#allocation5], %s1728_s16, %s1728_s16, %s1729_s17  }
  0x18   :  { %1723 = dma.done.wait [#allocation3], 256  }
  0x19   :  { %1724 = vsyncadd [#allocation3], 4294967040 }
  0x1a   :  { %1725 = dma.done.wait [#allocation5], 2048  }
  0x1b   :  { %1726 = vsyncadd [#allocation5], 4294965248  ;;  %v1731_v0 = vmov 0.0   ;;  %vm1732_vm0 = vmmov 0   ;;  %vm80_vm1 = vcmask 130048   ;;  %v72_v1 = vld [vmem:[%s2099_s1 + $0x8] sm:$0xff]  ;;  %v214_v38 = vlaneseq }
  0x1c   :  { %1464 = vmatprep.subr.mxu1 %v1731_v0  ;;  %1472 = vmatprep.mubr.msk.f32.mxu1 %vm1732_vm0, %v1731_v0  ;;  %v71_v2 = vld [vmem:[%s2099_s1] sm:$0xff]  ;;  %v1813_v4 = vld [vmem:[%s2100_s2 + $0x18] sm:$0xff]  ;;  %v64_v5 = vld [vmem:[%s2098_s0 + $0x8] sm:$0xff]  ;;  %s1734_s28 = smov 32   ;;  %vm219_vm5 = vcmask 261120   ;;  %vm1152_vm6 = vcmask 523264  }
  0x1d   :  { %v63_v3 = vld [vmem:[%s2098_s0] sm:$0xff]  ;;  %1437 = vmatprep.subr.mxu0 %v72_v1  ;;  %1465 = vmatpush3.msra.mxu1 %v1813_v4  ;;  %v65_v6 = vld [vmem:[%s2098_s0 + $0x10] sm:$0xff]  ;;  %v66_v8 = vld [vmem:[%s2098_s0 + $0x18] sm:$0xff]  ;;  %v215_v39 = vand.u32 127, %v214_v38 }
  0x1e   :  { %1441 = vmatprep.mubr.msk.f32.mxu0 %vm80_vm1, %v63_v3  ;;  %1438 = vmatpush3.msra.mxu0 %v72_v1  ;;  %v1825_v7 = vld [vmem:[%s2100_s2 + $0x10] sm:$0xff]  ;;  %v67_v9 = vld [vmem:[%s2098_s0 + $0x20] sm:$0xff]  ;;  %v1843_v10 = vld [vmem:[%s2100_s2 + $0x8] sm:$0xff] }
  0x1f   :  { %1439 = vmatprep.subr.mxu0 %v71_v2  ;;  %1466 = vmatprep.subr.mxu1 %v1731_v0  ;;  %v1853_v11 = vld [vmem:[%s2100_s2] sm:$0xff]  ;;  %v68_v12 = vld [vmem:[%s2098_s0 + $0x28] sm:$0xff]  ;;  %v69_v13 = vld [vmem:[%s2098_s0 + $0x30] sm:$0xff]  ;;  %vm216_vm2 = vcmp.ge.s32.totalorder %v215_v39, 64  ;;  %vm217_vm3 = vcmp.lt.s32.totalorder %v215_v39, 96 }
  0x20   :  { %1440 = vmatpush3.msra.mxu0 %v71_v2  ;;  %1467 = vmatpush3.msra.mxu1 %v1825_v7  ;;  %v1873_v14 = vld [vmem:[%s2098_s0 + $0x38] sm:$0xff]  ;;  %v1327_v15 = vld [vmem:[%s2101_s3] ss:$0 sm:$0xff]  ;;  %vm1906_vm4 = vmand %vm216_vm2, %vm217_vm3  ;;  %s1733_s3 = smov 64  }
  0x21   :  { %1442 = vmatmul.mubr.msk.f32.vlgmr.msra.gmra.mxu0 %vm80_vm1, %v64_v5  ;;  %1453 = vmatprep.subr.mxu0 %v1731_v0 }
  0x22   :  { %1454 = vmatpush3.msra.mxu0 %v1813_v4  ;;  %1444 = vmatprep.mubr.msk.f32.mxu0 %vm80_vm1, %v65_v6 }
  0x23   :  { %1455 = vmatprep.subr.mxu0 %v1731_v0  ;;  %1468 = vmatprep.subr.mxu1 %v1731_v0 }
  0x24   :  { %1456 = vmatpush3.msra.mxu0 %v1825_v7  ;;  %1469 = vmatpush3.msra.mxu1 %v1843_v10 }
  0x25   :  { %1445 = vmatmul.mubr.msk.f32.gmra.mxu0 %vm80_vm1, %v66_v8  ;;  %1457 = vmatprep.subr.mxu0 %v1731_v0 }
  0x26   :  { %1447 = vmatprep.mubr.msk.f32.mxu0 %vm80_vm1, %v67_v9  ;;  %1458 = vmatpush3.msra.mxu0 %v1843_v10 }
  0x27   :  { %1459 = vmatprep.subr.mxu0 %v1731_v0  ;;  %1470 = vmatprep.subr.mxu1 %v1731_v0 }
  0x28   :  { %1460 = vmatpush3.msra.mxu0 %v1853_v11  ;;  %1471 = vmatpush3.msra.mxu1 %v1853_v11 }
  0x29   :  { %1448 = vmatmul.mubr.msk.f32.gmra.mxu0 %vm80_vm1, %v68_v12  ;;  %1475 = vmatprep.subr.mxu0 %v1731_v0 }
  0x2a   :  { %1450 = vmatprep.mubr.msk.f32.mxu0 %vm80_vm1, %v69_v13  ;;  %1486 = vmatprep.subr.mxu1 %v1731_v0 }
  0x2d   :  { %1451 = vmatmul.mubr.msk.f32.gmra.mxu0 %vm80_vm1, %v1873_v14 }
  0x2e   :  { %1461 = vmatprep.mubr.msk.f32.mxu0 %vm1732_vm0, %v1731_v0 }
  0x31   :  { %1462 = vmatmul.mubr.f32.vlgmr.msra.gmra.mxu0 %v1731_v0 }
  0x32   :  { %1476 = vmatpush3.msra.mxu0 %v1813_v4  ;;  %1483 = vmatprep.mubr.msk.f32.mxu0 %vm1732_vm0, %v1731_v0 }
  0x33   :  { %1477 = vmatprep.subr.mxu0 %v1731_v0 }
  0x34   :  { %1478 = vmatpush3.msra.mxu0 %v1825_v7 }
  0x35   :  { %1479 = vmatprep.subr.mxu0 %v1731_v0 }
  0x36   :  { %1480 = vmatpush3.msra.mxu0 %v1843_v10 }
  0x37   :  { %1481 = vmatprep.subr.mxu0 %v1731_v0 }
  0x38   :  { %1482 = vmatpush3.msra.mxu0 %v1853_v11 }
  0x39   :  { %1497 = vmatprep.subr.mxu0 %v1731_v0 }
  0xe1   :  { %v1443_v16 = vpop.f32.mrf.mxu0 }
  0xe2   :  { %v177_v17 = vadd.f32 %v1443_v16, %v1327_v15 }
  0xe3   :  { %v171_v18 = vpop.f32.mrf.mxu0 }
  0xe4   :  { %v172_v30 = vadd.f32 %v1327_v15, %v171_v18 }
  0xe5   :  { %v1446_v19 = vpop.f32.mrf.mxu0 }
  0xe6   :  { %v1894_v20 = vadd.f32 %v1446_v19, %v1327_v15 }
  0xe7   :  { %v181_v21 = vpop.f32.mrf.mxu0 }
  0xe8   :  { %v1896_v22 = vadd.f32 %v1327_v15, %v181_v21 }
  0xe9   :  { %v1449_v23 = vpop.f32.mrf.mxu0 }
  0xea   :  { %v1898_v24 = vadd.f32 %v1449_v23, %v1327_v15 }
  0xeb   :  { %v191_v25 = vpop.f32.mrf.mxu0 }
  0xec   :  { %v1900_v26 = vadd.f32 %v1327_v15, %v191_v25 }
  0xed   :  { %v1452_v27 = vpop.f32.mrf.mxu0 }
  0xee   :  { %v1902_v28 = vadd.f32 %v1452_v27, %v1327_v15 }
  0xef   :  { %v201_v29 = vpop.f32.mrf.mxu0 }
  0xf0   :  { %v1904_v31 = vadd.f32 %v1327_v15, %v201_v29 }
  0xf1   :  { %v289_v32 = vpop.f32.mrf.mxu0 }
  0xf2   :  { %v293_v33 = vadd.f32 %v289_v32, %v172_v30 }
  0xf3   :  { %v1463_v34 = vpop.f32.mrf.mxu0 }
  0xf4   :  { %v1336_v35 = vmul.f32 -1.442695, %v293_v33 }
  0xf6   :  { %1611 = vpow2.f32 %v1336_v35 }
  0xf7   :  { %1613 = vtanh.f32 %v293_v33 }
 0x103   :  { %v1612_v36 = vpop.eup %1611 }
 0x104   :  { %v298_v37 = vadd.f32 1.0, %v1612_v36  ;;  %v1614_v41 = vpop.eup %1613 }
 0x106   :  { %1615 = vrcp.f32 %v298_v37 }
 0x113   :  { %v1616_v42 = vpop.eup %1615 }
 0x114   :  { %v301_v43 = vsel %vm1906_vm4, %v1614_v41, %v1616_v42 }
 0x115   :  { %304 = vrot.lane.b32.xlu0 %v301_v43, %s1733_s3  ;;  %v302_v46 = vmul.f32 0.0, %v301_v43 }
 0x187   :  { %v305_v44 = vpop.permute.xlu0 %304 }
 0x188   :  { %v307_v45 = vmul.f32 %v305_v44, %v301_v43 }
 0x18a   :  { %309 = vrot.lane.b32.xlu0 %v307_v45, %s1734_s28 }
 0x1fc   :  { %v310_v47 = vpop.permute.xlu0 %309 }
 0x1fd   :  { %v312_v48 = vadd.f32 %v310_v47, %v302_v46 }
 0x1ff   :  { %1617 = vtanh.f32 %v312_v48 }
 0x20c   :  { %v1618_v49 = vpop.eup %1617 }
 0x20d   :  { %315 = vrot.lane.b32.xlu1 %v1618_v49, %s1733_s3 }
 0x27f   :  { %v316_v50 = vpop.permute.xlu1 %315 }
 0x280   :  { %v318_v51 = vmul.f32 %v316_v50, %v301_v43 }
 0x282   :  { %320 = vrot.lane.b32.xlu1 %v318_v51, %s1734_s28 }
 0x2f4   :  { %v321_v52 = vpop.permute.xlu1 %320 }
 0x2f5   :  { %1473 = vmatmul.mubr.msk.f32.vlgmr.msra.gmra.mxu1 %vm219_vm5, %v321_v52 }
 0x2f6   :  { %1487 = vmatpush3.msra.mxu1 %v1813_v4  ;;  %1494 = vmatprep.mubr.msk.f32.mxu1 %vm1732_vm0, %v1731_v0 }
 0x2f7   :  { %1488 = vmatprep.subr.mxu1 %v1731_v0 }
 0x2f8   :  { %1489 = vmatpush3.msra.mxu1 %v1825_v7 }
 0x2f9   :  { %1490 = vmatprep.subr.mxu1 %v1731_v0 }
 0x2fa   :  { %1491 = vmatpush3.msra.mxu1 %v1843_v10 }
 0x2fb   :  { %1492 = vmatprep.subr.mxu1 %v1731_v0 }
 0x2fc   :  { %1493 = vmatpush3.msra.mxu1 %v1853_v11 }
 0x2fd   :  { %1508 = vmatprep.subr.mxu1 %v1731_v0 }
 0x3b5   :  { %v390_v53 = vpop.f32.mrf.mxu1 }
 0x3b6   :  { %v394_v54 = vadd.f32 %v390_v53, %v177_v17 }
 0x3b7   :  { %v1474_v55 = vpop.f32.mrf.mxu1 }
 0x3b8   :  { %v1338_v56 = vmul.f32 -1.442695, %v394_v54 }
 0x3ba   :  { %1619 = vpow2.f32 %v1338_v56 }
 0x3bb   :  { %1621 = vtanh.f32 %v394_v54 }
 0x3c7   :  { %v1620_v57 = vpop.eup %1619 }
 0x3c8   :  { %v399_v58 = vadd.f32 1.0, %v1620_v57  ;;  %v1622_v59 = vpop.eup %1621 }
 0x3ca   :  { %1623 = vrcp.f32 %v399_v58 }
 0x3d7   :  { %v1624_v60 = vpop.eup %1623 }
 0x3d8   :  { %v402_v61 = vsel %vm1906_vm4, %v1622_v59, %v1624_v60 }
 0x3d9   :  { %405 = vrot.lane.b32.xlu0 %v402_v61, %s1733_s3  ;;  %v403_v1 = vmul.f32 %v402_v61, %v312_v48 }
 0x44b   :  { %v406_v62 = vpop.permute.xlu0 %405 }
 0x44c   :  { %v408_v63 = vmul.f32 %v406_v62, %v402_v61 }
 0x44e   :  { %410 = vrot.lane.b32.xlu1 %v408_v63, %s1734_s28 }
 0x4c0   :  { %v411_v2 = vpop.permute.xlu1 %410 }
 0x4c1   :  { %v413_v3 = vadd.f32 %v411_v2, %v403_v1 }
 0x4c3   :  { %1625 = vtanh.f32 %v413_v3 }
 0x4d0   :  { %v1626_v5 = vpop.eup %1625 }
 0x4d1   :  { %416 = vrot.lane.b32.xlu0 %v1626_v5, %s1733_s3 }
 0x543   :  { %v417_v6 = vpop.permute.xlu0 %416 }
 0x544   :  { %v419_v8 = vmul.f32 %v417_v6, %v402_v61 }
 0x546   :  { %421 = vrot.lane.b32.xlu1 %v419_v8, %s1734_s28 }
 0x5b8   :  { %v422_v9 = vpop.permute.xlu1 %421 }
 0x5b9   :  { %1484 = vmatmul.mubr.msk.f32.vlgmr.msra.gmra.mxu0 %vm219_vm5, %v422_v9 }
 0x5ba   :  { %1498 = vmatpush3.msra.mxu0 %v1813_v4  ;;  %1505 = vmatprep.mubr.msk.f32.mxu0 %vm1732_vm0, %v1731_v0 }
 0x5bb   :  { %1499 = vmatprep.subr.mxu0 %v1731_v0 }
 0x5bc   :  { %1500 = vmatpush3.msra.mxu0 %v1825_v7 }
 0x5bd   :  { %1501 = vmatprep.subr.mxu0 %v1731_v0 }
 0x5be   :  { %1502 = vmatpush3.msra.mxu0 %v1843_v10 }
 0x5bf   :  { %1503 = vmatprep.subr.mxu0 %v1731_v0 }
 0x5c0   :  { %1504 = vmatpush3.msra.mxu0 %v1853_v11 }
 0x5c1   :  { %1519 = vmatprep.subr.mxu0 %v1731_v0 }
 0x679   :  { %v491_v12 = vpop.f32.mrf.mxu0 }
 0x67a   :  { %v495_v13 = vadd.f32 %v491_v12, %v1896_v22 }
 0x67b   :  { %v1485_v15 = vpop.f32.mrf.mxu0 }
 0x67c   :  { %v1340_v16 = vmul.f32 -1.442695, %v495_v13 }
 0x67e   :  { %1627 = vpow2.f32 %v1340_v16 }
 0x67f   :  { %1629 = vtanh.f32 %v495_v13 }
 0x68b   :  { %v1628_v17 = vpop.eup %1627 }
 0x68c   :  { %v500_v18 = vadd.f32 1.0, %v1628_v17  ;;  %v1630_v19 = vpop.eup %1629 }
 0x68e   :  { %1631 = vrcp.f32 %v500_v18 }
 0x69b   :  { %v1632_v21 = vpop.eup %1631 }
 0x69c   :  { %v503_v23 = vsel %vm1906_vm4, %v1630_v19, %v1632_v21 }
 0x69d   :  { %506 = vrot.lane.b32.xlu0 %v503_v23, %s1733_s3  ;;  %v504_v29 = vmul.f32 %v503_v23, %v413_v3 }
 0x70f   :  { %v507_v25 = vpop.permute.xlu0 %506 }
 0x710   :  { %v509_v27 = vmul.f32 %v507_v25, %v503_v23 }
 0x712   :  { %511 = vrot.lane.b32.xlu1 %v509_v27, %s1734_s28 }
 0x784   :  { %v512_v22 = vpop.permute.xlu1 %511 }
 0x785   :  { %v514_v30 = vadd.f32 %v512_v22, %v504_v29 }
 0x787   :  { %1633 = vtanh.f32 %v514_v30 }
 0x794   :  { %v1634_v32 = vpop.eup %1633 }
 0x795   :  { %517 = vrot.lane.b32.xlu0 %v1634_v32, %s1733_s3 }
 0x807   :  { %v518_v33 = vpop.permute.xlu0 %517 }
 0x808   :  { %v520_v34 = vmul.f32 %v518_v33, %v503_v23 }
 0x80a   :  { %522 = vrot.lane.b32.xlu1 %v520_v34, %s1734_s28 }
 0x87c   :  { %v523_v35 = vpop.permute.xlu1 %522 }
 0x87d   :  { %1495 = vmatmul.mubr.msk.f32.vlgmr.msra.gmra.mxu1 %vm219_vm5, %v523_v35 }
 0x87e   :  { %1509 = vmatpush3.msra.mxu1 %v1813_v4  ;;  %1516 = vmatprep.mubr.msk.f32.mxu1 %vm1732_vm0, %v1731_v0 }
 0x87f   :  { %1510 = vmatprep.subr.mxu1 %v1731_v0 }
 0x880   :  { %1511 = vmatpush3.msra.mxu1 %v1825_v7 }
 0x881   :  { %1512 = vmatprep.subr.mxu1 %v1731_v0 }
 0x882   :  { %1513 = vmatpush3.msra.mxu1 %v1843_v10 }
 0x883   :  { %1514 = vmatprep.subr.mxu1 %v1731_v0 }
 0x884   :  { %1515 = vmatpush3.msra.mxu1 %v1853_v11 }
 0x885   :  { %1530 = vmatprep.subr.mxu1 %v1731_v0 }
 0x93d   :  { %v592_v36 = vpop.f32.mrf.mxu1 }
 0x93e   :  { %v596_v37 = vadd.f32 %v592_v36, %v1894_v20 }
 0x93f   :  { %v1496_v38 = vpop.f32.mrf.mxu1 }
 0x940   :  { %v1342_v39 = vmul.f32 -1.442695, %v596_v37 }
 0x942   :  { %1635 = vpow2.f32 %v1342_v39 }
 0x943   :  { %1637 = vtanh.f32 %v596_v37 }
 0x94f   :  { %v1636_v41 = vpop.eup %1635 }
 0x950   :  { %v601_v42 = vadd.f32 1.0, %v1636_v41  ;;  %v1638_v43 = vpop.eup %1637 }
 0x952   :  { %1639 = vrcp.f32 %v601_v42 }
 0x95f   :  { %v1640_v44 = vpop.eup %1639 }
 0x960   :  { %v604_v45 = vsel %vm1906_vm4, %v1638_v43, %v1640_v44 }
 0x961   :  { %607 = vrot.lane.b32.xlu0 %v604_v45, %s1733_s3  ;;  %v605_v48 = vmul.f32 %v604_v45, %v514_v30 }
 0x9d3   :  { %v608_v46 = vpop.permute.xlu0 %607 }
 0x9d4   :  { %v610_v47 = vmul.f32 %v608_v46, %v604_v45  ;;  %v1029_v46 = vld [vmem:[#allocation2 + $0x8] sm:$0xff] }
 0x9d6   :  { %612 = vrot.lane.b32.xlu1 %v610_v47, %s1734_s28  ;;  %v1028_v47 = vld [vmem:[#allocation2] sm:$0xff] }
 0xa48   :  { %v613_v20 = vpop.permute.xlu1 %612 }
 0xa49   :  { %v615_v49 = vadd.f32 %v613_v20, %v605_v48 }
 0xa4b   :  { %1641 = vtanh.f32 %v615_v49 }
 0xa58   :  { %v1642_v50 = vpop.eup %1641 }
 0xa59   :  { %618 = vrot.lane.b32.xlu0 %v1642_v50, %s1733_s3 }
 0xacb   :  { %v619_v51 = vpop.permute.xlu0 %618 }
 0xacc   :  { %v621_v52 = vmul.f32 %v619_v51, %v604_v45 }
 0xace   :  { %623 = vrot.lane.b32.xlu1 %v621_v52, %s1734_s28 }
 0xb40   :  { %v624_v53 = vpop.permute.xlu1 %623 }
 0xb41   :  { %1506 = vmatmul.mubr.msk.f32.vlgmr.msra.gmra.mxu0 %vm219_vm5, %v624_v53 }
 0xb42   :  { %1520 = vmatpush3.msra.mxu0 %v1813_v4  ;;  %1527 = vmatprep.mubr.msk.f32.mxu0 %vm1732_vm0, %v1731_v0 }
 0xb43   :  { %1521 = vmatprep.subr.mxu0 %v1731_v0 }
 0xb44   :  { %1522 = vmatpush3.msra.mxu0 %v1825_v7 }
 0xb45   :  { %1523 = vmatprep.subr.mxu0 %v1731_v0 }
 0xb46   :  { %1524 = vmatpush3.msra.mxu0 %v1843_v10 }
 0xb47   :  { %1525 = vmatprep.subr.mxu0 %v1731_v0 }
 0xb48   :  { %1526 = vmatpush3.msra.mxu0 %v1853_v11 }
 0xb49   :  { %1541 = vmatprep.subr.mxu0 %v1731_v0 }
 0xc01   :  { %v693_v54 = vpop.f32.mrf.mxu0 }
 0xc02   :  { %v697_v55 = vadd.f32 %v693_v54, %v1900_v26 }
 0xc03   :  { %v1507_v56 = vpop.f32.mrf.mxu0 }
 0xc04   :  { %v1344_v57 = vmul.f32 -1.442695, %v697_v55 }
 0xc06   :  { %1643 = vpow2.f32 %v1344_v57 }
 0xc07   :  { %1645 = vtanh.f32 %v697_v55  ;;  %v1352_v55 = vld [vmem:[%s2103_s5] ss:$0 sm:$0xff]  ;;  %s1735_s5 = smov 96  }
 0xc13   :  { %v1644_v58 = vpop.eup %1643 }
 0xc14   :  { %v702_v59 = vadd.f32 1.0, %v1644_v58  ;;  %v1646_v60 = vpop.eup %1645 }
 0xc16   :  { %1647 = vrcp.f32 %v702_v59 }
 0xc23   :  { %v1648_v61 = vpop.eup %1647 }
 0xc24   :  { %v705_v62 = vsel %vm1906_vm4, %v1646_v60, %v1648_v61 }
 0xc25   :  { %708 = vrot.lane.b32.xlu0 %v705_v62, %s1733_s3  ;;  %v706_v2 = vmul.f32 %v705_v62, %v615_v49 }
 0xc97   :  { %v709_v63 = vpop.permute.xlu0 %708 }
 0xc98   :  { %v711_v1 = vmul.f32 %v709_v63, %v705_v62 }
 0xc9a   :  { %713 = vrot.lane.b32.xlu1 %v711_v1, %s1734_s28 }
 0xd0c   :  { %v714_v26 = vpop.permute.xlu1 %713 }
 0xd0d   :  { %v716_v3 = vadd.f32 %v714_v26, %v706_v2 }
 0xd0f   :  { %1649 = vtanh.f32 %v716_v3 }
 0xd1c   :  { %v1650_v5 = vpop.eup %1649 }
 0xd1d   :  { %719 = vrot.lane.b32.xlu0 %v1650_v5, %s1733_s3 }
 0xd8f   :  { %v720_v6 = vpop.permute.xlu0 %719 }
 0xd90   :  { %v722_v8 = vmul.f32 %v720_v6, %v705_v62 }
 0xd92   :  { %724 = vrot.lane.b32.xlu1 %v722_v8, %s1734_s28 }
 0xe04   :  { %v725_v9 = vpop.permute.xlu1 %724 }
 0xe05   :  { %1517 = vmatmul.mubr.msk.f32.vlgmr.msra.gmra.mxu1 %vm219_vm5, %v725_v9 }
 0xe06   :  { %1531 = vmatpush3.msra.mxu1 %v1813_v4  ;;  %1538 = vmatprep.mubr.msk.f32.mxu1 %vm1732_vm0, %v1731_v0 }
 0xe07   :  { %1532 = vmatprep.subr.mxu1 %v1731_v0 }
 0xe08   :  { %1533 = vmatpush3.msra.mxu1 %v1825_v7 }
 0xe09   :  { %1534 = vmatprep.subr.mxu1 %v1731_v0 }
 0xe0a   :  { %1535 = vmatpush3.msra.mxu1 %v1843_v10 }
 0xe0b   :  { %1536 = vmatprep.subr.mxu1 %v1731_v0 }
 0xe0c   :  { %1537 = vmatpush3.msra.mxu1 %v1853_v11 }
 0xe0d   :  { %1567 = vmatprep.subr.mxu1 %v1731_v0 }
 0xec5   :  { %v794_v12 = vpop.f32.mrf.mxu1 }
 0xec6   :  { %v798_v4 = vadd.f32 %v794_v12, %v1898_v24 }
 0xec7   :  { %v1518_v13 = vpop.f32.mrf.mxu1 }
 0xec8   :  { %v1346_v15 = vmul.f32 -1.442695, %v798_v4  ;;  %v1143_v13 = vld [vmem:[%s2104_s6 + $0x30] sm:$0xff] }
 0xeca   :  { %1651 = vpow2.f32 %v1346_v15  ;;  %v1142_v15 = vld [vmem:[%s2104_s6 + $0x28] sm:$0xff] }
 0xecb   :  { %1653 = vtanh.f32 %v798_v4  ;;  %v1144_v4 = vld [vmem:[%s2104_s6 + $0x38] sm:$0xff] }
 0xed7   :  { %v1652_v16 = vpop.eup %1651 }
 0xed8   :  { %v803_v17 = vadd.f32 1.0, %v1652_v16  ;;  %v1654_v7 = vpop.eup %1653  ;;  %v1141_v16 = vld [vmem:[%s2104_s6 + $0x20] sm:$0xff] }
 0xeda   :  { %1655 = vrcp.f32 %v803_v17  ;;  %v1140_v17 = vld [vmem:[%s2104_s6 + $0x18] sm:$0xff] }
 0xee7   :  { %v1656_v18 = vpop.eup %1655 }
 0xee8   :  { %v806_v10 = vsel %vm1906_vm4, %v1654_v7, %v1656_v18  ;;  %v1139_v7 = vld [vmem:[%s2104_s6 + $0x10] sm:$0xff] }
 0xee9   :  { %809 = vrot.lane.b32.xlu0 %v806_v10, %s1733_s3  ;;  %v807_v21 = vmul.f32 %v806_v10, %v716_v3 }
 0xf5b   :  { %v810_v11 = vpop.permute.xlu0 %809 }
 0xf5c   :  { %v812_v19 = vmul.f32 %v810_v11, %v806_v10 }
 0xf5e   :  { %814 = vrot.lane.b32.xlu1 %v812_v19, %s1734_s28 }
 0xfd0   :  { %v815_v24 = vpop.permute.xlu1 %814 }
 0xfd1   :  { %v817_v23 = vadd.f32 %v815_v24, %v807_v21  ;;  %v1137_v21 = vld [vmem:[%s2104_s6] sm:$0xff]  ;;  %v1242_v24 = vld [vmem:[#allocation4 + $0x78] sm:$0xff] }
 0xfd3   :  { %1657 = vtanh.f32 %v817_v23 }
 0xfe0   :  { %v1658_v25 = vpop.eup %1657 }
 0xfe1   :  { %820 = vrot.lane.b32.xlu0 %v1658_v25, %s1733_s3  ;;  %v1240_v25 = vld [vmem:[#allocation4 + $0x68] sm:$0xff] }
0x1053   :  { %v821_v27 = vpop.permute.xlu0 %820 }
0x1054   :  { %v823_v29 = vmul.f32 %v821_v27, %v806_v10  ;;  %v1138_v10 = vld [vmem:[%s2104_s6 + $0x8] sm:$0xff]  ;;  %v1239_v27 = vld [vmem:[#allocation4 + $0x60] sm:$0xff] }
0x1056   :  { %825 = vrot.lane.b32.xlu1 %v823_v29, %s1734_s28  ;;  %v1238_v29 = vld [vmem:[#allocation4 + $0x58] sm:$0xff] }
0x10c8   :  { %v826_v22 = vpop.permute.xlu1 %825 }
0x10c9   :  { %1528 = vmatmul.mubr.msk.f32.vlgmr.msra.gmra.mxu0 %vm219_vm5, %v826_v22  ;;  %v1237_v22 = vld [vmem:[#allocation4 + $0x50] sm:$0xff] }
0x10ca   :  { %1545 = vmatprep.mubr.msk.f32.mxu0 %vm1732_vm0, %v1731_v0  ;;  %1542 = vmatpush3.msra.mxu0 %v1029_v46  ;;  %v1355_v46 = vld [vmem:[%s2105_s7] ss:$0 sm:$0xff] }
0x10cb   :  { %1543 = vmatprep.subr.mxu0 %v1731_v0 }
0x10cc   :  { %1544 = vmatpush3.msra.mxu0 %v1028_v47 }
0x10cd   :  { %1546 = vmatmul.mubr.msk.f32.vlgmr.msra.gmra.mxu0 %vm80_vm1, %v1873_v14  ;;  %1548 = vmatprep.subr.mxu0 %v1731_v0 }
0x10ce   :  { %1564 = vmatprep.mubr.msk.f32.mxu0 %vm1732_vm0, %v1731_v0  ;;  %1549 = vmatpush3.msra.mxu0 %v1144_v4 }
0x10cf   :  { %1550 = vmatprep.subr.mxu0 %v1731_v0 }
0x10d0   :  { %1551 = vmatpush3.msra.mxu0 %v1143_v13 }
0x10d1   :  { %1552 = vmatprep.subr.mxu0 %v1731_v0 }
0x10d2   :  { %1553 = vmatpush3.msra.mxu0 %v1142_v15 }
0x10d3   :  { %1554 = vmatprep.subr.mxu0 %v1731_v0 }
0x10d4   :  { %1555 = vmatpush3.msra.mxu0 %v1141_v16 }
0x10d5   :  { %1556 = vmatprep.subr.mxu0 %v1731_v0 }
0x10d6   :  { %1557 = vmatpush3.msra.mxu0 %v1140_v17 }
0x10d7   :  { %1558 = vmatprep.subr.mxu0 %v1731_v0 }
0x10d8   :  { %1559 = vmatpush3.msra.mxu0 %v1139_v7 }
0x10d9   :  { %1560 = vmatprep.subr.mxu0 %v1731_v0 }
0x10da   :  { %1561 = vmatpush3.msra.mxu0 %v1138_v10 }
0x10db   :  { %1562 = vmatprep.subr.mxu0 %v1731_v0 }
0x10dc   :  { %1563 = vmatpush3.msra.mxu0 %v1137_v21 }
0x1189   :  { %v895_v30 = vpop.f32.mrf.mxu0 }
0x118a   :  { %v899_v32 = vadd.f32 %v895_v30, %v1904_v31 }
0x118b   :  { %v1529_v33 = vpop.f32.mrf.mxu0 }
0x118c   :  { %v1348_v34 = vmul.f32 -1.442695, %v899_v32  ;;  %v1236_v33 = vld [vmem:[#allocation4 + $0x48] sm:$0xff] }
0x118d   :  { %v1106_v50 = vpop.f32.mrf.mxu0 }
0x118e   :  { %1659 = vpow2.f32 %v1348_v34  ;;  %v1107_v58 = vadd.f32 %v1352_v55, %v1106_v50  ;;  %v1235_v34 = vld [vmem:[#allocation4 + $0x40] sm:$0xff]  ;;  %v1357_v50 = vld [vmem:[%s2107_s9] ss:$0 sm:$0xff] }
0x118f   :  { %1661 = vtanh.f32 %v899_v32  ;;  %v1547_v51 = vpop.f32.mrf.mxu0 }
0x1190   :  { %v1354_v62 = vmul.f32 -1.442695, %v1107_v58 }
0x119b   :  { %v1660_v35 = vpop.eup %1659 }
0x119c   :  { %v904_v36 = vadd.f32 1.0, %v1660_v35  ;;  %v1662_v37 = vpop.eup %1661  ;;  %v1234_v35 = vld [vmem:[#allocation4 + $0x38] sm:$0xff] }
0x119e   :  { %1663 = vrcp.f32 %v904_v36  ;;  %v1233_v36 = vld [vmem:[#allocation4 + $0x30] sm:$0xff] }
0x11ab   :  { %v1664_v38 = vpop.eup %1663 }
0x11ac   :  { %v907_v39 = vsel %vm1906_vm4, %v1662_v37, %v1664_v38  ;;  %v1232_v37 = vld [vmem:[#allocation4 + $0x28] sm:$0xff]  ;;  %v1231_v38 = vld [vmem:[#allocation4 + $0x20] sm:$0xff] }
0x11ad   :  { %910 = vrot.lane.b32.xlu0 %v907_v39, %s1733_s3  ;;  %v908_v43 = vmul.f32 %v907_v39, %v817_v23  ;;  %v1241_v23 = vld [vmem:[#allocation4 + $0x70] sm:$0xff] }
0x121f   :  { %v911_v41 = vpop.permute.xlu0 %910 }
0x1220   :  { %v913_v42 = vmul.f32 %v911_v41, %v907_v39 }
0x1222   :  { %915 = vrot.lane.b32.xlu1 %v913_v42, %s1734_s28 }
0x1294   :  { %v916_v31 = vpop.permute.xlu1 %915 }
0x1295   :  { %v918_v44 = vadd.f32 %v916_v31, %v908_v43  ;;  %v1229_v31 = vld [vmem:[#allocation4 + $0x10] sm:$0xff] }
0x1297   :  { %1665 = vtanh.f32 %v918_v44 }
0x12a4   :  { %v1666_v45 = vpop.eup %1665 }
0x12a5   :  { %921 = vrot.lane.b32.xlu0 %v1666_v45, %s1733_s3  ;;  %v1227_v45 = vld [vmem:[#allocation4] sm:$0xff] }
0x1317   :  { %v922_v48 = vpop.permute.xlu0 %921 }
0x1318   :  { %v924_v20 = vmul.f32 %v922_v48, %v907_v39  ;;  %v1230_v39 = vld [vmem:[#allocation4 + $0x18] sm:$0xff] }
0x131a   :  { %926 = vrot.lane.b32.xlu1 %v924_v20, %s1734_s28 }
0x138c   :  { %v927_v49 = vpop.permute.xlu1 %926 }
0x138d   :  { %1539 = vmatmul.mubr.msk.f32.vlgmr.msra.gmra.mxu1 %vm219_vm5, %v927_v49 }
0x138e   :  { %1599 = vmatprep.mubr.msk.f32.mxu1 %vm1732_vm0, %v1731_v0  ;;  %1568 = vmatpush3.msra.mxu1 %v1242_v24 }
0x138f   :  { %1569 = vmatprep.subr.mxu1 %v1731_v0 }
0x1390   :  { %1570 = vmatpush3.msra.mxu1 %v1241_v23 }
0x1391   :  { %1571 = vmatprep.subr.mxu1 %v1731_v0 }
0x1392   :  { %1572 = vmatpush3.msra.mxu1 %v1240_v25 }
0x1393   :  { %1573 = vmatprep.subr.mxu1 %v1731_v0 }
0x1394   :  { %1574 = vmatpush3.msra.mxu1 %v1239_v27 }
0x1395   :  { %1575 = vmatprep.subr.mxu1 %v1731_v0 }
0x1396   :  { %1576 = vmatpush3.msra.mxu1 %v1238_v29 }
0x1397   :  { %1577 = vmatprep.subr.mxu1 %v1731_v0 }
0x1398   :  { %1578 = vmatpush3.msra.mxu1 %v1237_v22 }
0x1399   :  { %1579 = vmatprep.subr.mxu1 %v1731_v0 }
0x139a   :  { %1580 = vmatpush3.msra.mxu1 %v1236_v33 }
0x139b   :  { %1581 = vmatprep.subr.mxu1 %v1731_v0 }
0x139c   :  { %1582 = vmatpush3.msra.mxu1 %v1235_v34 }
0x139d   :  { %1583 = vmatprep.subr.mxu1 %v1731_v0 }
0x139e   :  { %1584 = vmatpush3.msra.mxu1 %v1234_v35 }
0x139f   :  { %1585 = vmatprep.subr.mxu1 %v1731_v0 }
0x13a0   :  { %1586 = vmatpush3.msra.mxu1 %v1233_v36 }
0x13a1   :  { %1587 = vmatprep.subr.mxu1 %v1731_v0 }
0x13a2   :  { %1588 = vmatpush3.msra.mxu1 %v1232_v37 }
0x13a3   :  { %1589 = vmatprep.subr.mxu1 %v1731_v0 }
0x13a4   :  { %1590 = vmatpush3.msra.mxu1 %v1231_v38 }
0x13a5   :  { %1591 = vmatprep.subr.mxu1 %v1731_v0 }
0x13a6   :  { %1592 = vmatpush3.msra.mxu1 %v1230_v39 }
0x13a7   :  { %1593 = vmatprep.subr.mxu1 %v1731_v0 }
0x13a8   :  { %1594 = vmatpush3.msra.mxu1 %v1229_v31 }
0x13a9   :  { %1595 = vmatprep.subr.mxu1 %v1731_v0 }
0x144d   :  { %v996_v52 = vpop.f32.mrf.mxu1 }
0x144e   :  { %v1000_v14 = vadd.f32 %v996_v52, %v1902_v28 }
0x144f   :  { %v1540_v53 = vpop.f32.mrf.mxu1 }
0x1450   :  { %v1350_v54 = vmul.f32 -1.442695, %v1000_v14 }
0x1452   :  { %1667 = vpow2.f32 %v1350_v54 }
0x1453   :  { %1669 = vtanh.f32 %v1000_v14 }
0x145f   :  { %v1668_v56 = vpop.eup %1667 }
0x1460   :  { %v1005_v57 = vadd.f32 1.0, %v1668_v56  ;;  %v1670_v59 = vpop.eup %1669 }
0x1462   :  { %1671 = vrcp.f32 %v1005_v57 }
0x1463   :  { %1673 = vtanh.f32 %v1107_v58 }
0x1464   :  { %1675 = vpow2.f32 %v1354_v62 }
0x146f   :  { %v1672_v60 = vpop.eup %1671 }
0x1470   :  { %v2030_v61 = vsel %vm1906_vm4, %v1670_v59, %v1672_v60  ;;  %v1674_v28 = vpop.eup %1673 }
0x1471   :  { %1011 = vrot.lane.b32.xlu0 %v2030_v61, %s1733_s3  ;;  %v1676_v63 = vpop.eup %1675  ;;  %v1009_v8 = vmul.f32 %v2030_v61, %v918_v44  ;;  %v1228_v44 = vld [vmem:[#allocation4 + $0x8] sm:$0xff] }
0x1472   :  { %v1113_v1 = vadd.f32 1.0, %v1676_v63  ;;  %1596 = vmatpush3.msra.mxu1 %v1228_v44 }
0x1473   :  { %1597 = vmatprep.subr.mxu1 %v1731_v0 }
0x1474   :  { %1677 = vrcp.f32 %v1113_v1  ;;  %1598 = vmatpush3.msra.mxu1 %v1227_v45 }
0x1475   :  { %1118 = vrot.lane.b32.xlu0 %v1674_v28, %s1733_s3 }
0x1481   :  { %v1678_v3 = vpop.eup %1677 }
0x14e3   :  { %v1012_v2 = vpop.permute.xlu0 %1011 }
0x14e4   :  { %v1014_v26 = vmul.f32 %v1012_v2, %v2030_v61 }
0x14e6   :  { %1016 = vrot.lane.b32.xlu1 %v1014_v26, %s1734_s28 }
0x14e7   :  { %v1119_v40 = vpop.permute.xlu0 %1118 }
0x14e8   :  { %v1121_v5 = vmul.f32 %v1678_v3, %v1119_v40 }
0x14ea   :  { %1679 = vtanh.f32 %v1121_v5 }
0x14f7   :  { %v1680_v6 = vpop.eup %1679 }
0x14f8   :  { %1124 = vrot.lane.b32.xlu0 %v1680_v6, %s1735_s5 }
0x1558   :  { %v1017_v9 = vpop.permute.xlu1 %1016 }
0x1559   :  { %v1019_v12 = vadd.f32 %v1017_v9, %v1009_v8 }
0x155b   :  { %1681 = vtanh.f32 %v1019_v12 }
0x1568   :  { %v1682_v18 = vpop.eup %1681 }
0x1569   :  { %1022 = vrot.lane.b32.xlu1 %v1682_v18, %s1733_s3 }
0x156a   :  { %v1125_v11 = vpop.permute.xlu0 %1124 }
0x156b   :  { %v1127_v19 = vmul.f32 %v1678_v3, %v1125_v11 }
0x156d   :  { %1133 = vrot.lane.b32.xlu0 %v1127_v19, %s1733_s3 }
0x15db   :  { %v1023_v30 = vpop.permute.xlu1 %1022 }
0x15dc   :  { %v1025_v32 = vmul.f32 %v1023_v30, %v2030_v61 }
0x15de   :  { %1129 = vrot.lane.b32.xlu1 %v1025_v32, %s1734_s28 }
0x15df   :  { %v1134_v41 = vpop.permute.xlu0 %1133 }
0x1650   :  { %v1130_v42 = vpop.permute.xlu1 %1129 }
0x1651   :  { %v1136_v43 = vsel %vm219_vm5, %v1130_v42, %v1134_v41 }
0x1652   :  { %1565 = vmatmul.mubr.msk.f32.vlgmr.msra.gmra.mxu0 %vm1152_vm6, %v1136_v43 }
0x1712   :  { %v1222_v47 = vpop.f32.mrf.mxu0 }
0x1713   :  { %v1223_v48 = vadd.f32 %v1355_v46, %v1222_v47 }
0x1714   :  { %v1566_v20 = vpop.f32.mrf.mxu0 }
0x1715   :  { %v1226_v49 = vmax.f32 %v1223_v48, 0.0 }
0x1717   :  { %1600 = vmatmul.mubr.f32.vlgmr.msra.gmra.mxu1 %v1226_v49 }
0x17d7   :  { %v1316_v51 = vpop.f32.mrf.mxu1 }
0x17d8   :  { %v1317_v52 = vadd.f32 %v1357_v50, %v1316_v51 }
0x17d9   :  { %v1601_v14 = vpop.f32.mrf.mxu1 }
0x17da   :  { %1320 = vst [vmem:[%s2108_s10] sm:$0xff] %v1317_v52 }
0x17db   :  { %1325 = vsyncpa [#allocation3], 1 }
0x17dc   :  { %1326 = vsyncpa [#allocation5], 1 }

</bundles_post_ra>
